<compile_context>
chip_gen: v7x
topology: tpu7x:2x2x1
jax: 0.10.0
libtpu: 0.0.40
codegen_flags: <defaults>
</compile_context>

<pallas_src>
import jax
import jax.numpy as jnp
from jax.experimental import pallas as pl
from jax.experimental.pallas import tpu as pltpu

HIDDEN = 30   # fixed by the module (nn.Linear(input_size, 30))
SUBLANE = 8   # TPU sublane width


def _round_up(x, m):
    return ((x + m - 1) // m) * m


def _mlp_kernel(x_ref, w1_ref, b1_ref, w2_ref, b2_ref, out_ref):
    # fc1: [TB, D] @ [D, H] + [1, H], ReLU   (bias add + relu ride the VPU)
    h = jnp.dot(x_ref[...], w1_ref[...], preferred_element_type=jnp.float32)
    h = jnp.maximum(h + b1_ref[...], 0.0)
    # fc2: [TB, H] @ [H, A] + [1, A]  -> narrow output, stored directly
    q = jnp.dot(h, w2_ref[...], preferred_element_type=jnp.float32)
    out_ref[...] = (q + b2_ref[...]).astype(out_ref.dtype)


def network_forward(state, w1, b1, w2, b2, *, block_b=4096):
    """Pallas forward pass.

    state: [B, input_size] float32
    w1:    [input_size, 30] float32   (transposed vs. torch's [30, input_size])
    b1:    [1, 30]          float32
    w2:    [30, nb_action]  float32
    b2:    [1, nb_action]   float32
    returns q_values: [B, nb_action] float32
    """
    B, D = state.shape
    H = w1.shape[1]
    A = w2.shape[1]
    f32 = jnp.float32

    # Batch tile: as large as block_b, but capped near B/2 so any batch that
    # spans more than one tile produces >= 2 grid steps (megacore on v7x).
    target = max(1, min(block_b, pl.cdiv(B, 2)))
    TB = _round_up(target, SUBLANE)
    grid = (pl.cdiv(B, TB),)

    x = state.astype(f32)
    w1 = w1.astype(f32)
    b1 = b1.reshape(1, H).astype(f32)
    w2 = w2.astype(f32)
    b2 = b2.reshape(1, A).astype(f32)

    out = pl.pallas_call(
        _mlp_kernel,
        out_shape=jax.ShapeDtypeStruct((B, A), f32),
        grid_spec=pl.GridSpec(
            grid=grid,
            in_specs=[
                pl.BlockSpec((TB, D), lambda i: (i, 0)),   # x: tiled over batch
                pl.BlockSpec((D, H), lambda i: (0, 0)),    # w1: resident
                pl.BlockSpec((1, H), lambda i: (0, 0)),    # b1: resident
                pl.BlockSpec((H, A), lambda i: (0, 0)),    # w2: resident
                pl.BlockSpec((1, A), lambda i: (0, 0)),    # b2: resident
            ],
            out_specs=pl.BlockSpec((TB, A), lambda i: (i, 0)),
        ),
        compiler_params=pltpu.CompilerParams(
            dimension_semantics=("parallel",),   # batch axis shards across TCs (v7x)
        ),
    )(x, w1, b1, w2, b2)

    return out


def init_params(key, input_size, nb_action):
    """Deterministic param init (PyTorch nn.Linear-style uniform bounds)."""
    k1, k2, k3, k4 = jax.random.split(key, 4)
    bound1 = 1.0 / jnp.sqrt(input_size)
    bound2 = 1.0 / jnp.sqrt(HIDDEN)
    w1 = jax.random.uniform(k1, (input_size, HIDDEN), jnp.float32, -bound1, bound1)
    b1 = jax.random.uniform(k2, (1, HIDDEN), jnp.float32, -bound1, bound1)
    w2 = jax.random.uniform(k3, (HIDDEN, nb_action), jnp.float32, -bound2, bound2)
    b2 = jax.random.uniform(k4, (1, nb_action), jnp.float32, -bound2, bound2)
    return w1, b1, w2, b2


if __name__ == "__main__":
    key = jax.random.PRNGKey(0)
    k_state, k_params = jax.random.split(key)

    batch = 2
    input_size = 16
    nb_action = 4

    state = jax.random.normal(k_state, (batch, input_size), jnp.float32)
    w1, b1, w2, b2 = init_params(k_params, input_size, nb_action)

    q_values = network_forward(state, w1, b1, w2, b2)
    jax.block_until_ready(q_values)

    # Reference check against plain JAX (same math as the torch forward).
    ref = jnp.maximum(state @ w1 + b1, 0.0) @ w2 + b2
    assert q_values.shape == (batch, nb_action)
    assert jnp.allclose(q_values, ref, atol=1e-5, rtol=1e-5)

    # Exercise the multi-tile + ragged-tail path (B not a multiple of TB).
    big_state = jax.random.normal(k_state, (513, input_size), jnp.float32)
    big_q = network_forward(big_state, w1, b1, w2, b2)
    jax.block_until_ready(big_q)
    big_ref = jnp.maximum(big_state @ w1 + b1, 0.0) @ w2 + b2
    assert big_q.shape == (513, nb_action)
    assert jnp.allclose(big_q, big_ref, atol=1e-4, rtol=1e-4)

    print("KERNEL_OK")
</pallas_src>

<mosaic_0001>
module attributes {stable_mosaic.version = 11 : i64} {
  func.func @_mlp_kernel(%arg0: i32, %arg1: memref<8x16xf32, #tpu.memory_space<vmem>>, %arg2: memref<16x30xf32, #tpu.memory_space<vmem>>, %arg3: memref<1x30xf32, #tpu.memory_space<vmem>>, %arg4: memref<30x4xf32, #tpu.memory_space<vmem>>, %arg5: memref<1x4xf32, #tpu.memory_space<vmem>>, %arg6: memref<8x4xf32, #tpu.memory_space<vmem>>) attributes {dimension_semantics = [#tpu.dimension_semantics<parallel>], iteration_bounds = array<i64: 1>, scalar_prefetch = 0 : i64, scratch_operands = 0 : i64, tpu.core_type = #tpu.core_type<tc>, window_params = [{transform_indices = @transform_0, window_bounds = array<i64: 8, 16>}, {pipeline_mode = #tpu.pipeline_mode<synchronous>, transform_indices = @transform_1, window_bounds = array<i64: 16, 30>}, {pipeline_mode = #tpu.pipeline_mode<synchronous>, transform_indices = @transform_2, window_bounds = array<i64: 1, 30>}, {pipeline_mode = #tpu.pipeline_mode<synchronous>, transform_indices = @transform_3, window_bounds = array<i64: 30, 4>}, {pipeline_mode = #tpu.pipeline_mode<synchronous>, transform_indices = @transform_4, window_bounds = array<i64: 1, 4>}, {transform_indices = @transform_5, window_bounds = array<i64: 8, 4>}]} {
    %c0 = arith.constant 0 : index
    %c0_0 = arith.constant 0 : index
    %0 = vector.load %arg1[%c0, %c0_0] : memref<8x16xf32, #tpu.memory_space<vmem>>, vector<8x16xf32>
    %c0_1 = arith.constant 0 : index
    %c0_2 = arith.constant 0 : index
    %1 = vector.load %arg2[%c0_1, %c0_2] : memref<16x30xf32, #tpu.memory_space<vmem>>, vector<16x30xf32>
    %cst = arith.constant dense<0.000000e+00> : vector<8x30xf32>
    %2 = tpu.matmul %0, %1, %cst {dimension_numbers = #tpu.dot_dimension_numbers<[1], [0], [0], [1], [0, 0, 1, 1], [], []>} : vector<8x16xf32>, vector<16x30xf32>, vector<8x30xf32> -> vector<8x30xf32>
    %c0_3 = arith.constant 0 : index
    %c0_4 = arith.constant 0 : index
    %3 = vector.load %arg3[%c0_3, %c0_4] : memref<1x30xf32, #tpu.memory_space<vmem>>, vector<1x30xf32>
    %4 = vector.broadcast %3 : vector<1x30xf32> to vector<8x30xf32>
    %5 = arith.addf %2, %4 : vector<8x30xf32>
    %cst_5 = arith.constant 0.000000e+00 : f32
    %6 = vector.broadcast %cst_5 : f32 to vector<8x30xf32>
    %7 = arith.maximumf %5, %6 : vector<8x30xf32>
    %c0_6 = arith.constant 0 : index
    %c0_7 = arith.constant 0 : index
    %8 = vector.load %arg4[%c0_6, %c0_7] : memref<30x4xf32, #tpu.memory_space<vmem>>, vector<30x4xf32>
    %cst_8 = arith.constant dense<0.000000e+00> : vector<8x4xf32>
    %9 = tpu.matmul %7, %8, %cst_8 {dimension_numbers = #tpu.dot_dimension_numbers<[1], [0], [0], [1], [0, 0, 1, 1], [], []>} : vector<8x30xf32>, vector<30x4xf32>, vector<8x4xf32> -> vector<8x4xf32>
    %c0_9 = arith.constant 0 : index
    %c0_10 = arith.constant 0 : index
    %10 = vector.load %arg5[%c0_9, %c0_10] : memref<1x4xf32, #tpu.memory_space<vmem>>, vector<1x4xf32>
    %11 = vector.broadcast %10 : vector<1x4xf32> to vector<8x4xf32>
    %12 = arith.addf %9, %11 : vector<8x4xf32>
    %c0_11 = arith.constant 0 : index
    %c0_12 = arith.constant 0 : index
    %13 = vector.load %arg6[%c0_11, %c0_12] : memref<8x4xf32, #tpu.memory_space<vmem>>, vector<8x4xf32>
    tpu.vector_store %arg6[%c0_11, %c0_12], %12 {strides = array<i32>} : memref<8x4xf32, #tpu.memory_space<vmem>>, vector<8x4xf32>,
    return
  }
  func.func @transform_0(%arg0: i32) -> (i32, i32) {
    %c0_i32 = arith.constant 0 : i32
    %c0_i32_0 = arith.constant 0 : i32
    return %arg0, %c0_i32 : i32, i32
  }
  func.func @transform_1(%arg0: i32) -> (i32, i32) {
    %c0_i32 = arith.constant 0 : i32
    %c0_i32_0 = arith.constant 0 : i32
    %c0_i32_1 = arith.constant 0 : i32
    return %c0_i32, %c0_i32_0 : i32, i32
  }
  func.func @transform_2(%arg0: i32) -> (i32, i32) {
    %c0_i32 = arith.constant 0 : i32
    %c0_i32_0 = arith.constant 0 : i32
    %c0_i32_1 = arith.constant 0 : i32
    return %c0_i32, %c0_i32_0 : i32, i32
  }
  func.func @transform_3(%arg0: i32) -> (i32, i32) {
    %c0_i32 = arith.constant 0 : i32
    %c0_i32_0 = arith.constant 0 : i32
    %c0_i32_1 = arith.constant 0 : i32
    return %c0_i32, %c0_i32_0 : i32, i32
  }
  func.func @transform_4(%arg0: i32) -> (i32, i32) {
    %c0_i32 = arith.constant 0 : i32
    %c0_i32_0 = arith.constant 0 : i32
    %c0_i32_1 = arith.constant 0 : i32
    return %c0_i32, %c0_i32_0 : i32, i32
  }
  func.func @transform_5(%arg0: i32) -> (i32, i32) {
    %c0_i32 = arith.constant 0 : i32
    %c0_i32_0 = arith.constant 0 : i32
    return %arg0, %c0_i32 : i32, i32
  }
}

</mosaic_0001>

<bundles_post_ra>
// kernel: tpu_custom_call.1
= control target key start
LH: loop header
LB: loop body
LE: loop exit
PB: predicated region body
PF: predicated region fallthrough
CT: control target
= control target key end

     0   :  { %10 = vsyncpa [#allocation3], 0  ;;  %v285_v2 = vmov 0.0|0.0   ;;  %vm286_vm0 = vmmov 0   ;;  %v287_v6 = vmov 0.0   ;;  %vm31_vm1 = vcmask 130048   ;;  %s361_s0 = inlined_call_operand.vmem [shape: f32[2,16], index: 0, kind: input, shape index: {}]   ;;  %s362_s1 = inlined_call_operand.vmem [shape: f32[16,30], index: 1, kind: input, shape index: {}]   ;;  %s363_s2 = inlined_call_operand.vmem [shape: f32[1,30], index: 2, kind: input, shape index: {}]   ;;  %s364_s3 = inlined_call_operand.vmem [shape: f32[30,4], index: 3, kind: input, shape index: {}]   ;;  %s365_s4 = inlined_call_operand.vmem [shape: f32[1,4], index: 4, kind: input, shape index: {}]   ;;  %s366_s5 = inlined_call_operand.hbm [shape: f32[2,4], index: 5, kind: output, shape index: {}]  }
   0x1   :  { %v22_v0 = vld [vmem:[%s362_s1] sm:$0xff]  ;;  %v23_v1 = vld [vmem:[%s362_s1 + $0x8] sm:$0xff]  ;;  %244 = vmatprep.subr.bf16.mxu0 %v285_v2  ;;  %247 = vmatprep.subr.bf16.mxu1 %v285_v2  ;;  %v108_v9 = vld [vmem:[%s364_s3 + $0x10] sm:$0xff]  ;;  %vm121_vm2 = vcmask 1045504   ;;  %vm288_vm3 = vmmov 1   ;;  %vm117_vm5 = vcmask 244736  }
   0x2   :  { %v245_v3 = vpack.c.bf16 %v23_v1, %v22_v0  ;;  %v106_v4 = vld [vmem:[%s364_s3] sm:$0xff]  ;;  %v107_v5 = vld [vmem:[%s364_s3 + $0x8] sm:$0xff]  ;;  %230 = vmatprep.mubr.msk.f32.mxu0 %vm286_vm0, %v287_v6  ;;  %241 = vmatprep.mubr.msk.f32.mxu1 %vm286_vm0, %v287_v6  ;;  %v109_v10 = vld [vmem:[%s364_s3 + $0x18] sm:$0x3f]  ;;  %vm195_vm6 = vcmask 31744  }
   0x3   :  { %v248_v7 = vpack.c.bf16 %v107_v5, %v106_v4  ;;  %v21_v8 = vld [vmem:[%s361_s0] sm:$0xff]  ;;  %v251_v11 = vpack.c.bf16 %v109_v10, %v108_v9  ;;  %vm252_vm4 = vmpackc.low %vm121_vm2, %vm288_vm3 }
   0x4   :  { %246 = vmatpush3.bf16.msra.mxu0 %v245_v3  ;;  %v213_v12 = vld [vmem:[%s363_s2] ss:$0 sm:$0xff] }
   0x5   :  { %249 = vmatpush3.bf16.msra.mxu1 %v248_v7  ;;  %v215_v17 = vld [vmem:[%s365_s4] ss:$0 sm:$0xff] }
   0x6   :  { %250 = vmatprep.subr.bf16.mxu1 %v285_v2 }
   0x7   :  { %231 = vmatmul.mubr.msk.f32.vlgmr.msra.gmra.mrb[0].mxu0 %vm31_vm1, %v21_v8 }
   0x9   :  { %253 = vmatpush3.bf16.msk.msra.mxu1 %vm252_vm4, %v251_v11 }
  0xda   :  { %v101_v13 = vpop.f32.mrb[0].mxu0 }
  0xdb   :  { %v102_v14 = vadd.f32 %v213_v12, %v101_v13  ;;  %v232_v15 = vpop.f32.mrb[1].mxu0 }
  0xdd   :  { %v105_v16 = vmax.f32 %v102_v14, 0.0 }
  0xdf   :  { %242 = vmatmul.mubr.msk.f32.vlgmr.msra.gmra.mrb[0].mxu1 %vm117_vm5, %v105_v16 }
 0x1b2   :  { %v191_v18 = vpop.f32.mrb[0].mxu1 }
 0x1b3   :  { %v192_v19 = vadd.f32 %v215_v17, %v191_v18  ;;  %v243_v20 = vpop.f32.mrb[1].mxu1 }
 0x1b5   :  { %196 = vst.msk [vmem:[#allocation2] sm:$0xff] %vm195_vm6, %v192_v19 }
 0x1b6   :  { %201 = vsyncadd [#allocation3], 96  ;;  %s289_s3 = smov [#allocation2]  }
 0x1b7   :  { %s202_s9 = sshll.u32 %s289_s3, 4  ;;  %s203_s9 = int_to_ptr.vmem [resolvable:$true] %s202_s9 }
 0x1b8   :  { %s261_s2 = scalar_lea.vmem %s203_s9, 32  ;;  %s265_s10 = scalar_lea.vmem %s203_s9, 128 }
 0x1b9   :  { %p262_p0 = scmp.ne.s32.totalorder %s203_s9, %s261_s2  ;;  %p266_p1 = scmp.lt.s32.totalorder %s203_s9, %s203_s9 }
 0x1ba   :  { %p267_p2 = scmp.lt.s32.totalorder %s265_s10, %s261_s2 }
 0x1bc   :  { %p268_p3 = por %p267_p2, %p266_p1 }
 0x1be   :  { %p269_p4 = pnand %p268_p3, %p262_p0 }
 0x1c0   :  { %272 = shalt.err (!%p269_p4)
}
 0x1c1   :  { %s273_s4 = scalar_lea.hbm %s366_s5, 32 }
 0x1c2   :  { %p274_p5 = scmp.ne.s32.totalorder %s366_s5, %s273_s4  ;;  %p277_p6 = scmp.lt.u32.totalorder %s273_s4, %s366_s5 }
 0x1c4   :  { %p279_p7 = pnand %p277_p6, %p274_p5 }
 0x1c6   :  { %282 = shalt.err (!%p279_p7)
}
 0x1c7   :  { %s290_s17 = smov 32   ;;  %s291_s18 = smov 2  }
 0x1c8   :  { %208 = dma.vmem_to_hbm [thread:$0]  %s203_s9, 32, %s366_s5, [#allocation3], %s290_s17, %s290_s17, %s291_s18  }
 0x1c9   :  { %283 = dma.done.wait [#allocation3], 128  }
 0x1ca   :  { %284 = vsyncadd [#allocation3], 4294967168 }
 0x1cb   :  { %212 = vsyncpa [#allocation3], 1 }

</bundles_post_ra>
